<compile_context>
chip_gen: v6e
topology: v6e:2x2x1
jax: 0.10.0
libtpu: 0.0.40
codegen_flags: <defaults>
</compile_context>

<pallas_src>
import jax
import jax.numpy as jnp
from jax.experimental import pallas as pl
from jax.experimental.pallas import tpu as pltpu


def _mlp_kernel(xT_ref, w1_ref, b1_ref, w2_ref, b2_ref, w3_ref, b3_ref, o_ref):
    """Fused 3-layer MLP. Activations are (features, batch): batch on lanes."""
    x = xT_ref[...]                                                      # (F_in, B)
    h1 = jnp.dot(w1_ref[...], x, preferred_element_type=jnp.float32)    # (H, B)
    h1 = jnp.maximum(h1 + b1_ref[...], 0.0)                             # bias bcast over lanes
    h2 = jnp.dot(w2_ref[...], h1, preferred_element_type=jnp.float32)   # (H, B)
    h2 = jnp.maximum(h2 + b2_ref[...], 0.0)
    out = jnp.dot(w3_ref[...], h2, preferred_element_type=jnp.float32)  # (F_out, B)
    o_ref[...] = (out + b3_ref[...]).astype(o_ref.dtype)


def blob_model_forward(x, params, *, tile_b=None):
    """Pallas forward pass for BlobModel.

    x: (B, input_features) f32.
    params: (w1, b1, w2, b2, w3, b3) — weights in PyTorch (out, in) layout,
            biases shaped (out, 1).
    tile_b: None -> single kernel invocation (whole batch at once; preferred
            for small/medium B).  Otherwise a multiple of 128 dividing B:
            batch is tiled along the lane axis with a 'parallel' grid.
    """
    w1, b1, w2, b2, w3, b3 = params
    B, F_in = x.shape
    H = w1.shape[0]
    F_out = w3.shape[0]

    # Layout plumbing only: put the batch dimension on the lane axis.
    xT = x.T  # (F_in, B)

    if tile_b is None or tile_b >= B:
        # Single invocation: one lane-dense store of the whole (F_out, B) result.
        outT = pl.pallas_call(
            _mlp_kernel,
            out_shape=jax.ShapeDtypeStruct((F_out, B), jnp.float32),
        )(xT, w1, b1, w2, b2, w3, b3)
    else:
        assert B % tile_b == 0, "batch must be divisible by tile_b"
        assert tile_b % 128 == 0, "tile_b must be lane-dense (multiple of 128)"
        grid = (B // tile_b,)
        # Grid-invariant weight/bias blocks: fetched once, reused every step.
        w_spec = lambda shape: pl.BlockSpec(shape, lambda i: (0, 0))
        outT = pl.pallas_call(
            _mlp_kernel,
            out_shape=jax.ShapeDtypeStruct((F_out, B), jnp.float32),
            grid_spec=pltpu.PrefetchScalarGridSpec(
                num_scalar_prefetch=0,
                grid=grid,
                in_specs=[
                    pl.BlockSpec((F_in, tile_b), lambda i: (0, i)),   # x tile (lane-dense)
                    w_spec((H, F_in)),                                 # w1
                    w_spec((H, 1)),                                    # b1
                    w_spec((H, H)),                                    # w2
                    w_spec((H, 1)),                                    # b2
                    w_spec((F_out, H)),                                # w3
                    w_spec((F_out, 1)),                                # b3
                ],
                out_specs=pl.BlockSpec((F_out, tile_b), lambda i: (0, i)),
            ),
            compiler_params=pltpu.CompilerParams(
                dimension_semantics=("parallel",),  # shard batch tiles across TCs
            ),
        )(xT, w1, b1, w2, b2, w3, b3)

    return outT.T  # back to (B, F_out)


def init_blob_model_params(key, input_features, out_features, hidden_units=8):
    """torch.nn.Linear-style init: uniform +/- 1/sqrt(fan_in).

    Weights are (out_features, in_features) (PyTorch layout); biases (out, 1).
    """
    def linear_init(k, fan_in, fan_out):
        kw, kb = jax.random.split(k)
        bound = 1.0 / jnp.sqrt(fan_in)
        w = jax.random.uniform(kw, (fan_out, fan_in), jnp.float32, -bound, bound)
        b = jax.random.uniform(kb, (fan_out, 1), jnp.float32, -bound, bound)
        return w, b

    k1, k2, k3 = jax.random.split(key, 3)
    w1, b1 = linear_init(k1, input_features, hidden_units)
    w2, b2 = linear_init(k2, hidden_units, hidden_units)
    w3, b3 = linear_init(k3, hidden_units, out_features)
    return (w1, b1, w2, b2, w3, b3)


def blob_model_ref(x, params):
    """Pure-JAX reference (standard (batch, feature) layout)."""
    w1, b1, w2, b2, w3, b3 = params
    h1 = jnp.maximum(x @ w1.T + b1.T, 0.0)
    h2 = jnp.maximum(h1 @ w2.T + b2.T, 0.0)
    return h2 @ w3.T + b3.T


if __name__ == "__main__":
    # BlobModel(input_features=2, out_features=4, hidden_units=8).
    input_features = 2
    out_features = 4
    hidden_units = 8
    batch = 32

    key = jax.random.PRNGKey(0)
    kx, kp = jax.random.split(key)
    x = jax.random.normal(kx, (batch, input_features), dtype=jnp.float32)
    params = init_blob_model_params(kp, input_features, out_features, hidden_units)

    # Default path: single kernel invocation, whole batch at once.
    out = jax.block_until_ready(blob_model_forward(x, params))
    ref = blob_model_ref(x, params)
    assert out.shape == (batch, out_features)
    assert jnp.allclose(out, ref, atol=1e-5, rtol=1e-5), "mismatch vs reference (single step)"

    # Large-batch path: lane-dense 128-wide batch tiles with a parallel grid.
    x_big = jax.random.normal(kx, (512, input_features), dtype=jnp.float32)
    out_big = jax.block_until_ready(blob_model_forward(x_big, params, tile_b=128))
    ref_big = blob_model_ref(x_big, params)
    assert out_big.shape == (512, out_features)
    assert jnp.allclose(out_big, ref_big, atol=1e-5, rtol=1e-5), "mismatch vs reference (tiled)"

    print("KERNEL_OK")
</pallas_src>

<mosaic_0001>
module attributes {stable_mosaic.version = 11 : i64} {
  func.func @_mlp_kernel(%arg0: memref<2x32xf32, #tpu.memory_space<vmem>>, %arg1: memref<8x2xf32, #tpu.memory_space<vmem>>, %arg2: memref<8x1xf32, #tpu.memory_space<vmem>>, %arg3: memref<8x8xf32, #tpu.memory_space<vmem>>, %arg4: memref<8x1xf32, #tpu.memory_space<vmem>>, %arg5: memref<4x8xf32, #tpu.memory_space<vmem>>, %arg6: memref<4x1xf32, #tpu.memory_space<vmem>>, %arg7: memref<4x32xf32, #tpu.memory_space<vmem>>) attributes {dimension_semantics = [], scalar_prefetch = 0 : i64, scratch_operands = 0 : i64, tpu.core_type = #tpu.core_type<tc>} {
    %c0 = arith.constant 0 : index
    %c0_0 = arith.constant 0 : index
    %0 = vector.load %arg0[%c0, %c0_0] : memref<2x32xf32, #tpu.memory_space<vmem>>, vector<2x32xf32>
    %c0_1 = arith.constant 0 : index
    %c0_2 = arith.constant 0 : index
    %1 = vector.load %arg1[%c0_1, %c0_2] : memref<8x2xf32, #tpu.memory_space<vmem>>, vector<8x2xf32>
    %cst = arith.constant dense<0.000000e+00> : vector<8x32xf32>
    %2 = tpu.matmul %1, %0, %cst {dimension_numbers = #tpu.dot_dimension_numbers<[1], [0], [0], [1], [0, 0, 1, 1], [], []>} : vector<8x2xf32>, vector<2x32xf32>, vector<8x32xf32> -> vector<8x32xf32>
    %c0_3 = arith.constant 0 : index
    %c0_4 = arith.constant 0 : index
    %3 = vector.load %arg2[%c0_3, %c0_4] : memref<8x1xf32, #tpu.memory_space<vmem>>, vector<8x1xf32>
    %4 = vector.broadcast %3 : vector<8x1xf32> to vector<8x32xf32>
    %5 = arith.addf %2, %4 : vector<8x32xf32>
    %cst_5 = arith.constant 0.000000e+00 : f32
    %6 = vector.broadcast %cst_5 : f32 to vector<8x32xf32>
    %7 = arith.maximumf %5, %6 : vector<8x32xf32>
    %c0_6 = arith.constant 0 : index
    %c0_7 = arith.constant 0 : index
    %8 = vector.load %arg3[%c0_6, %c0_7] : memref<8x8xf32, #tpu.memory_space<vmem>>, vector<8x8xf32>
    %cst_8 = arith.constant dense<0.000000e+00> : vector<8x32xf32>
    %9 = tpu.matmul %8, %7, %cst_8 {dimension_numbers = #tpu.dot_dimension_numbers<[1], [0], [0], [1], [0, 0, 1, 1], [], []>} : vector<8x8xf32>, vector<8x32xf32>, vector<8x32xf32> -> vector<8x32xf32>
    %c0_9 = arith.constant 0 : index
    %c0_10 = arith.constant 0 : index
    %10 = vector.load %arg4[%c0_9, %c0_10] : memref<8x1xf32, #tpu.memory_space<vmem>>, vector<8x1xf32>
    %11 = vector.broadcast %10 : vector<8x1xf32> to vector<8x32xf32>
    %12 = arith.addf %9, %11 : vector<8x32xf32>
    %cst_11 = arith.constant 0.000000e+00 : f32
    %13 = vector.broadcast %cst_11 : f32 to vector<8x32xf32>
    %14 = arith.maximumf %12, %13 : vector<8x32xf32>
    %c0_12 = arith.constant 0 : index
    %c0_13 = arith.constant 0 : index
    %15 = vector.load %arg5[%c0_12, %c0_13] : memref<4x8xf32, #tpu.memory_space<vmem>>, vector<4x8xf32>
    %cst_14 = arith.constant dense<0.000000e+00> : vector<4x32xf32>
    %16 = tpu.matmul %15, %14, %cst_14 {dimension_numbers = #tpu.dot_dimension_numbers<[1], [0], [0], [1], [0, 0, 1, 1], [], []>} : vector<4x8xf32>, vector<8x32xf32>, vector<4x32xf32> -> vector<4x32xf32>
    %c0_15 = arith.constant 0 : index
    %c0_16 = arith.constant 0 : index
    %17 = vector.load %arg6[%c0_15, %c0_16] : memref<4x1xf32, #tpu.memory_space<vmem>>, vector<4x1xf32>
    %18 = vector.broadcast %17 : vector<4x1xf32> to vector<4x32xf32>
    %19 = arith.addf %16, %18 : vector<4x32xf32>
    %c0_17 = arith.constant 0 : index
    %c0_18 = arith.constant 0 : index
    %20 = vector.load %arg7[%c0_17, %c0_18] : memref<4x32xf32, #tpu.memory_space<vmem>>, vector<4x32xf32>
    tpu.vector_store %arg7[%c0_17, %c0_18], %19 {strides = array<i32>} : memref<4x32xf32, #tpu.memory_space<vmem>>, vector<4x32xf32>,
    return
  }
}

</mosaic_0001>

<bundles_post_ra>
// kernel: tpu_custom_call.1
= control target key start
LH: loop header
LB: loop body
LE: loop exit
PB: predicated region body
PF: predicated region fallthrough
CT: control target
= control target key end

     0   :  { %vm39_vm0 = vcmask 1041408   ;;  %v345_v2 = vmov 0.0   ;;  %vm346_vm1 = vmmov 0   ;;  %vm35_vm2 = vcmask 15360   ;;  %s413_s0 = inlined_call_operand.vmem [shape: f32[2,32], index: 0, kind: input, shape index: {}]   ;;  %s414_s1 = inlined_call_operand.vmem [shape: f32[8,2], index: 1, kind: input, shape index: {}]   ;;  %s415_s2 = inlined_call_operand.vmem [shape: f32[8,1], index: 2, kind: input, shape index: {}]   ;;  %s416_s3 = inlined_call_operand.vmem [shape: f32[8,8], index: 3, kind: input, shape index: {}]   ;;  %s417_s4 = inlined_call_operand.vmem [shape: f32[8,1], index: 4, kind: input, shape index: {}]   ;;  %s418_s5 = inlined_call_operand.vmem [shape: f32[4,8], index: 5, kind: input, shape index: {}]   ;;  %s419_s6 = inlined_call_operand.vmem [shape: f32[4,1], index: 6, kind: input, shape index: {}]   ;;  %s420_s7 = inlined_call_operand.hbm [shape: f32[4,32], index: 7, kind: output, shape index: {}]  }
   0x1   :  { %v27_v0 = vld [vmem:[%s413_s0] sm:$0x3]  ;;  %302 = vmatprep.subr.mxu0 %v345_v2  ;;  %304 = vmatprep.mubr.msk.f32.mxu0 %vm346_vm1, %v345_v2 }
   0x2   :  { %v28_v1 = vld [vmem:[%s414_s1] sm:$0xff] }
   0x3   :  { %v29_v3 = vld [vmem:[%s415_s2] sm:$0xff] }
   0x4   :  { %12 = vsyncpa [#allocation3], 0  ;;  %303 = vmatpush3.msk.msra.mxu0 %vm39_vm0, %v27_v0  ;;  %v347_v4 = vmov 0   ;;  %v115_v5 = vld [vmem:[%s417_s4] sm:$0xff]  ;;  %307 = vmatprep.subr.mxu1 %v345_v2  ;;  %vm121_vm3 = vcmask 64512   ;;  %vm276_vm4 = vcmask 257024  }
   0x5   :  { %321 = vset.pattern.permute.xlu0 %v347_v4  ;;  %305 = vmatmul.mubr.msk.f32.vlgmr.msra.gmra.mxu0 %vm35_vm2, %v28_v1  ;;  %v114_v11 = vld [vmem:[%s416_s3] sm:$0xff]  ;;  %s348_s3 = smov [#allocation2]  }
   0x6   :  { %32 = vperm.xlu0 %321, %v29_v3   ;;  %309 = vmatprep.mubr.msk.f32.mxu1 %vm346_vm1, %v345_v2  ;;  %v197_v12 = vld [vmem:[%s419_s6] sm:$0xf]  ;;  %s284_s11 = sshll.u32 %s348_s3, 4  ;;  %s285_s11 = int_to_ptr.vmem [resolvable:$true] %s284_s11 }
   0x7   :  { %312 = vmatprep.subr.mxu0 %v345_v2  ;;  %314 = vmatprep.mubr.msk.f32.mxu0 %vm346_vm1, %v345_v2  ;;  %v196_v18 = vld [vmem:[%s418_s5] sm:$0xf]  ;;  %s323_s6 = scalar_lea.vmem %s285_s11, 64  ;;  %p328_p1 = scmp.lt.s32.totalorder %s285_s11, %s285_s11 }
   0x8   :  { %322 = vset.pattern.permute.xlu1 %v347_v4  ;;  %p324_p0 = scmp.ne.s32.totalorder %s285_s11, %s323_s6  ;;  %p329_p2 = scmp.lt.s32.totalorder %s323_s6, %s323_s6 }
   0x9   :  { %200 = vperm.xlu1 %322, %v197_v12  }
   0xa   :  { %118 = vperm.xlu0 %321, %v115_v5   ;;  %p330_p3 = por %p329_p2, %p328_p1 }
   0xc   :  { %p331_p4 = pnand %p330_p3, %p324_p0 }
  0x81   :  { %v33_v6 = vpop.permute.xlu0 %32 }
  0x84   :  { %v201_v19 = vpop.permute.xlu1 %200 }
  0x85   :  { %v119_v13 = vpop.permute.xlu0 %118 }
  0xc5   :  { %v109_v7 = vpop.f32.mrf.mxu0 }
  0xc6   :  { %v110_v8 = vadd.f32 %v109_v7, %v33_v6 }
  0xc7   :  { %v306_v9 = vpop.f32.mrf.mxu0 }
  0xc8   :  { %v113_v10 = vmax.f32 %v110_v8, 0.0 }
  0xca   :  { %308 = vmatpush3.msra.mxu1 %v113_v10 }
  0xcb   :  { %310 = vmatmul.mubr.msk.f32.vlgmr.msra.gmra.mxu1 %vm121_vm3, %v114_v11 }
 0x18b   :  { %v191_v14 = vpop.f32.mrf.mxu1 }
 0x18c   :  { %v192_v15 = vadd.f32 %v191_v14, %v119_v13 }
 0x18d   :  { %v311_v16 = vpop.f32.mrf.mxu1 }
 0x18e   :  { %v195_v17 = vmax.f32 %v192_v15, 0.0 }
 0x190   :  { %313 = vmatpush3.msra.mxu0 %v195_v17 }
 0x191   :  { %315 = vmatmul.mubr.msk.f32.vlgmr.msra.gmra.mxu0 %vm121_vm3, %v196_v18 }
 0x251   :  { %v272_v20 = vpop.f32.mrf.mxu0 }
 0x252   :  { %v273_v21 = vadd.f32 %v272_v20, %v201_v19 }
 0x253   :  { %v316_v22 = vpop.f32.mrf.mxu0 }
 0x254   :  { %277 = vst.msk [vmem:[#allocation2] sm:$0xf] %vm276_vm4, %v273_v21 }
 0x255   :  { %334 = shalt.err (!%p331_p4)
}
 0x256   :  { %287 = dma.vmem_to_hbm [thread:$0]  %s285_s11, 64, %s420_s7, [#allocation3]  }
 0x257   :  { %343 = dma.done.wait [#allocation3], 64  }
 0x258   :  { %344 = vsyncadd [#allocation3], 4294967232 }
 0x259   :  { %291 = vsyncpa [#allocation3], 1 }

</bundles_post_ra>
